<compile_context>
chip_gen: v7x
topology: tpu7x:2x2x1
jax: 0.10.0
libtpu: 0.0.40
codegen_flags: <defaults>
</compile_context>

<pallas_src>
import functools
import math

import jax
import jax.numpy as jnp
from jax.experimental import pallas as pl
from jax.experimental.pallas import tpu as pltpu

_EPS = 1e-8                 # torch.nn.CosineSimilarity default eps
_LANES = 128
_MAX_ROW_TILE = 32768       # upper bound on rows per grid step


def _round_up(a: int, b: int) -> int:
    return (a + b - 1) // b * b


def _cdiv(a: int, b: int) -> int:
    return -(-a // b)


def _vmem_limit_bytes() -> int:
    """Per-chip VMEM limit: ~96 MiB on 128-MiB chips (v5e/v6e), ~48 MiB on v7x."""
    cap = 0
    try:
        info = pltpu.get_tpu_info()
        for name in ("vmem_capacity_bytes", "vmem_size_bytes", "vmem_bytes"):
            v = getattr(info, name, None)
            if v:
                cap = int(v)
                break
    except Exception:
        cap = 0
    if cap <= 0:
        cap = 64 * 1024 * 1024          # conservative fallback (v7x per-TC physical)
    limit = min(cap * 3 // 4, 96 * 1024 * 1024)
    return max(limit, 8 * 1024 * 1024)


# --------------------------------------------------------------------------- #
# Kernels
# --------------------------------------------------------------------------- #
def _cosine_kernel(x_ref, y_ref, o_ref, *, inv_temperature: float):
    """Full-H kernel: one grid axis over row blocks."""
    x = x_ref[...].astype(jnp.float32)          # (row_tile, H) or (1, H) if shared
    y = y_ref[...].astype(jnp.float32)

    w12 = jnp.sum(x * y, axis=-1, keepdims=True)    # (rows, 1)
    w1 = jnp.sum(x * x, axis=-1, keepdims=True)
    w2 = jnp.sum(y * y, axis=-1, keepdims=True)

    inv_denom = jax.lax.rsqrt(jnp.maximum(w1 * w2, _EPS * _EPS))   # EUP slot
    val = (w12 * inv_denom) * inv_temperature       # (row_tile, 1)

    # Relay the per-row column into the lane-dense (1, row_tile//128, 128) block;
    # the XLU relayout is tiny (row_tile*4 B) vs. the input DMA and hides under it.
    o_ref[...] = val.reshape(o_ref.shape).astype(o_ref.dtype)


def _cosine_kernel_htiled(x_ref, y_ref, o_ref, w12_ref, w1_ref, w2_ref, *,
                          inv_temperature: float, h_valid):
    """H-tiled kernel: grid = (row_blocks, h_blocks); accumulates partial sums."""
    k = pl.program_id(1)

    @pl.when(k == 0)
    def _init():
        w12_ref[...] = jnp.zeros_like(w12_ref)
        w1_ref[...] = jnp.zeros_like(w1_ref)
        w2_ref[...] = jnp.zeros_like(w2_ref)

    x = x_ref[...].astype(jnp.float32)          # (rows_x, h_tile)
    y = y_ref[...].astype(jnp.float32)          # (rows_y, h_tile)

    if h_valid is not None:                     # mask ragged last H block (static)
        h_tile = x_ref.shape[-1]
        col = jax.lax.broadcasted_iota(jnp.int32, (1, h_tile), 1) + k * h_tile
        keep = col < h_valid
        x = jnp.where(keep, x, 0.0)
        y = jnp.where(keep, y, 0.0)

    w12_ref[...] += jnp.sum(x * y, axis=-1, keepdims=True)
    w1_ref[...] += jnp.sum(x * x, axis=-1, keepdims=True)
    w2_ref[...] += jnp.sum(y * y, axis=-1, keepdims=True)

    @pl.when(k == pl.num_programs(1) - 1)
    def _finalize():
        inv_denom = jax.lax.rsqrt(jnp.maximum(w1_ref[...] * w2_ref[...], _EPS * _EPS))
        val = (w12_ref[...] * inv_denom) * inv_temperature
        o_ref[...] = val.reshape(o_ref.shape).astype(o_ref.dtype)


# --------------------------------------------------------------------------- #
# Wrapper
# --------------------------------------------------------------------------- #
def cosine_similarity_pallas(x: jax.Array, y: jax.Array,
                             temperature: float = 0.1, *,
                             h_block: int | None = None) -> jax.Array:
    """Equivalent of CosineSimilarity(temperature).forward(x, y).

    h_block: optional forced H tile (multiple of 128) -- testing / huge-H knob.
    """
    out_shape = jnp.broadcast_shapes(x.shape, y.shape)
    h = out_shape[-1]
    batch_shape = out_shape[:-1]
    n = math.prod(batch_shape) if batch_shape else 1
    out_dtype = jnp.result_type(x.dtype, y.dtype)
    out_isize = jnp.dtype(out_dtype).itemsize
    inv_t = 1.0 / temperature

    def prep(a):
        """Flatten to 2-D without materializing broadcasts where possible."""
        nd = a.ndim
        if a.size == n * h and tuple(a.shape) == tuple(out_shape[len(out_shape) - nd:]):
            return a.reshape(n, h), False                 # already full (N, H)
        if n > 1 and a.shape[-1] == h and a.size == h:
            return a.reshape(1, h), True                  # one row shared by all
        # TODO(synk): partial broadcasts (e.g. x:(2,1,H) vs y:(1,8,H)) still
        # materialize the broadcast; could be expressed via index_map instead.
        return jnp.broadcast_to(a, out_shape).reshape(n, h), False

    x2, x_shared = prep(x)
    y2, y_shared = prep(y)

    # ---- chip-aware VMEM budget & per-row footprint --------------------------
    vmem_limit = _vmem_limit_bytes()
    tile_budget = vmem_limit * 7 // 10          # headroom for Mosaic scratch etc.

    h_pad = _round_up(h, _LANES)
    # Bytes per (row x feature element): double-buffered native input tiles for
    # each streamed operand, its f32 upcast copy, plus ~2 f32 product temps.
    per_elem = 2 * 4
    for arr, shared in ((x2, x_shared), (y2, y_shared)):
        if not shared:
            per_elem += 2 * arr.dtype.itemsize
            if arr.dtype != jnp.float32:
                per_elem += 4
    per_row = per_elem * h_pad + 2 * out_isize

    rows_cap = (tile_budget // per_row) // _LANES * _LANES
    force_h = h_block is not None and h_block < h
    use_h_tiling = force_h or rows_cap < _LANES

    # ---- rows -> sublanes; pad rows only for tiny N (cheap) -------------------
    if n < _LANES:
        pad = _LANES - n
        if not x_shared:
            x2 = jnp.pad(x2, ((0, pad), (0, 0)))
        if not y_shared:
            y2 = jnp.pad(y2, ((0, pad), (0, 0)))
        n_rows = _LANES
    else:
        # Ragged last row block: rows past n are read as undefined data, their
        # results are clamped by eps^2 and discarded by the wrapper slice.
        n_rows = n

    sublane = {4: 8, 2: 16, 1: 32}.get(out_isize, 8)
    row_align = sublane * _LANES                # 1024 (f32), 2048 (bf16), ...

    cost = pl.CostEstimate(
        flops=6 * n * h,
        transcendentals=n,
        bytes_accessed=int(x2.size * x2.dtype.itemsize
                           + y2.size * y2.dtype.itemsize + n * out_isize))

    compiler_kwargs = dict(vmem_limit_bytes=vmem_limit)
    # TODO(synk): on v7x, pltpu.CORE_PARALLEL on the row-block axis would drive
    # both TensorCores' DMA engines; kept as "parallel" for portability here.

    if not use_h_tiling:
        # ---------------- Regime A: full H in one block ----------------------
        rows_cap = min(max(rows_cap, _LANES), _MAX_ROW_TILE)
        row_tile = min(rows_cap, (n_rows // _LANES) * _LANES)
        if row_tile >= row_align:               # sublane-aligned writeback when big
            row_tile = row_tile // row_align * row_align
        num_blocks = _cdiv(n_rows, row_tile)
        r = row_tile // _LANES

        def in_spec(shared):
            if shared:
                return pl.BlockSpec((1, h), lambda i: (0, 0))
            return pl.BlockSpec((row_tile, h), lambda i: (i, 0))

        out = pl.pallas_call(
            functools.partial(_cosine_kernel, inv_temperature=inv_t),
            out_shape=jax.ShapeDtypeStruct((num_blocks, r, _LANES), out_dtype),
            grid_spec=pltpu.PrefetchScalarGridSpec(
                num_scalar_prefetch=0,
                grid=(num_blocks,),
                in_specs=[in_spec(x_shared), in_spec(y_shared)],
                out_specs=pl.BlockSpec((1, r, _LANES), lambda i: (i, 0, 0)),
            ),
            compiler_params=pltpu.CompilerParams(
                dimension_semantics=("parallel",), **compiler_kwargs),
            cost_estimate=cost,
        )(x2, y2)
    else:
        # ---------------- Regime B: H-tiled reduction axis -------------------
        row_tile = min(512, (n_rows // _LANES) * _LANES)
        if force_h:
            assert h_block % _LANES == 0 and h_block >= _LANES
            h_tile = h_block
        else:
            h_tile = (tile_budget // (row_tile * per_elem)) // _LANES * _LANES
            h_tile = max(_LANES, h_tile)
        num_h_blocks = _cdiv(h, h_tile)
        h_valid = h if h % h_tile else None     # lane-mask ragged last H block
        num_blocks = _cdiv(n_rows, row_tile)
        r = row_tile // _LANES

        def in_spec(shared):
            if shared:
                return pl.BlockSpec((1, h_tile), lambda i, k: (0, k))
            return pl.BlockSpec((row_tile, h_tile), lambda i, k: (i, k))

        out = pl.pallas_call(
            functools.partial(_cosine_kernel_htiled, inv_temperature=inv_t,
                              h_valid=h_valid),
            out_shape=jax.ShapeDtypeStruct((num_blocks, r, _LANES), out_dtype),
            grid_spec=pltpu.PrefetchScalarGridSpec(
                num_scalar_prefetch=0,
                grid=(num_blocks, num_h_blocks),
                in_specs=[in_spec(x_shared), in_spec(y_shared)],
                out_specs=pl.BlockSpec((1, r, _LANES), lambda i, k: (i, 0, 0)),
                scratch_shapes=[
                    pltpu.VMEM((row_tile, 1), jnp.float32),
                    pltpu.VMEM((1 if x_shared else row_tile, 1), jnp.float32),
                    pltpu.VMEM((1 if y_shared else row_tile, 1), jnp.float32),
                ],
            ),
            compiler_params=pltpu.CompilerParams(
                dimension_semantics=("parallel", "arbitrary"), **compiler_kwargs),
            cost_estimate=cost,
        )(x2, y2)

    return out.reshape(-1)[:n].reshape(batch_shape)


# --------------------------------------------------------------------------- #
# Self-test
# --------------------------------------------------------------------------- #
def _ref_cosine(a, b, temperature=0.1):
    a32 = jnp.asarray(a, jnp.float32)
    b32 = jnp.asarray(b, jnp.float32)
    w12 = jnp.sum(a32 * b32, axis=-1)
    w1 = jnp.sum(a32 * a32, axis=-1)
    w2 = jnp.sum(b32 * b32, axis=-1)
    return w12 * jax.lax.rsqrt(jnp.maximum(w1 * w2, _EPS * _EPS)) / temperature


if __name__ == "__main__":
    key = jax.random.PRNGKey(0)
    kx, ky = jax.random.split(key)

    def check(xa, ya, **kw):
        got = jax.block_until_ready(
            cosine_similarity_pallas(xa, ya, temperature=0.1, **kw))
        want = _ref_cosine(xa, ya, temperature=0.1)
        assert got.shape == want.shape, (got.shape, want.shape)
        assert jnp.allclose(got, want, atol=1e-4, rtol=1e-4), \
            float(jnp.max(jnp.abs(got - want)))

    # Main case: (batch=2, seq=64, hidden=32) -> 128 rows, one lane-dense tile.
    x = jax.random.normal(kx, (2, 64, 32), dtype=jnp.float32)
    y = jax.random.normal(ky, (2, 64, 32), dtype=jnp.float32)
    check(x, y)

    # Broadcast case: y shared across all batch dims (no broadcast_to HBM copy).
    check(x, jax.random.normal(ky, (1, 1, 32), dtype=jnp.float32))

    # Tiny-N case (N=16 < 128 -> padded to a single 128-row tile).
    check(jax.random.normal(kx, (2, 8, 32), dtype=jnp.float32),
          jax.random.normal(ky, (2, 8, 32), dtype=jnp.float32))

    # Multi-block + ragged last row block + unaligned tile (n=660, row_tile=640):
    # exercises the 3-D lane-dense output layout that replaces the old 2-D one.
    check(jax.random.normal(kx, (4, 165, 32), dtype=jnp.float32),
          jax.random.normal(ky, (4, 165, 32), dtype=jnp.float32))

    # H-tiled (reduction-axis) path, forced small h_block; last H block ragged.
    check(jax.random.normal(kx, (2, 128, 320), dtype=jnp.float32),
          jax.random.normal(ky, (2, 128, 320), dtype=jnp.float32), h_block=128)

    print("KERNEL_OK")
</pallas_src>

<mosaic_0001>
module attributes {stable_mosaic.version = 11 : i64} {
  func.func @_cosine_kernel(%arg0: i32, %arg1: memref<128x32xf32, #tpu.memory_space<vmem>>, %arg2: memref<128x32xf32, #tpu.memory_space<vmem>>, %arg3: memref<1x1x128xf32, #tpu.memory_space<vmem>>) attributes {dimension_semantics = [#tpu.dimension_semantics<parallel>], iteration_bounds = array<i64: 1>, scalar_prefetch = 0 : i64, scratch_operands = 0 : i64, tpu.core_type = #tpu.core_type<tc>, window_params = [{transform_indices = @transform_0, window_bounds = array<i64: 128, 32>}, {transform_indices = @transform_1, window_bounds = array<i64: 128, 32>}, {transform_indices = @transform_2, window_bounds = array<i64: 1, 1, 128>}]} {
    %c0 = arith.constant 0 : index
    %c0_0 = arith.constant 0 : index
    %0 = vector.load %arg1[%c0, %c0_0] : memref<128x32xf32, #tpu.memory_space<vmem>>, vector<128x32xf32>
    %c0_1 = arith.constant 0 : index
    %c0_2 = arith.constant 0 : index
    %1 = vector.load %arg2[%c0_1, %c0_2] : memref<128x32xf32, #tpu.memory_space<vmem>>, vector<128x32xf32>
    %2 = arith.mulf %0, %1 : vector<128x32xf32>
    %cst = arith.constant dense<0.000000e+00> : vector<128xf32>
    %3 = vector.multi_reduction <add>, %2, %cst [1] : vector<128x32xf32> to vector<128xf32>
    %4 = vector.shape_cast %3 : vector<128xf32> to vector<128x1xf32>
    %5 = arith.mulf %0, %0 : vector<128x32xf32>
    %cst_3 = arith.constant dense<0.000000e+00> : vector<128xf32>
    %6 = vector.multi_reduction <add>, %5, %cst_3 [1] : vector<128x32xf32> to vector<128xf32>
    %7 = vector.shape_cast %6 : vector<128xf32> to vector<128x1xf32>
    %8 = arith.mulf %1, %1 : vector<128x32xf32>
    %cst_4 = arith.constant dense<0.000000e+00> : vector<128xf32>
    %9 = vector.multi_reduction <add>, %8, %cst_4 [1] : vector<128x32xf32> to vector<128xf32>
    %10 = vector.shape_cast %9 : vector<128xf32> to vector<128x1xf32>
    %11 = arith.mulf %7, %10 : vector<128x1xf32>
    %cst_5 = arith.constant 1.000000e-16 : f32
    %12 = vector.broadcast %cst_5 : f32 to vector<128x1xf32>
    %13 = arith.maximumf %11, %12 : vector<128x1xf32>
    %14 = math.rsqrt %13 : vector<128x1xf32>
    %15 = arith.mulf %4, %14 : vector<128x1xf32>
    %cst_6 = arith.constant 1.000000e+01 : f32
    %16 = vector.broadcast %cst_6 : f32 to vector<128x1xf32>
    %17 = arith.mulf %15, %16 : vector<128x1xf32>
    %18 = vector.shape_cast %17 : vector<128x1xf32> to vector<1x1x128xf32>
    %c0_7 = arith.constant 0 : index
    %c0_8 = arith.constant 0 : index
    %c0_9 = arith.constant 0 : index
    %19 = vector.load %arg3[%c0_7, %c0_8, %c0_9] : memref<1x1x128xf32, #tpu.memory_space<vmem>>, vector<1x1x128xf32>
    tpu.vector_store %arg3[%c0_7, %c0_8, %c0_9], %18 {strides = array<i32>} : memref<1x1x128xf32, #tpu.memory_space<vmem>>, vector<1x1x128xf32>,
    return
  }
  func.func @transform_0(%arg0: i32) -> (i32, i32) {
    %c0_i32 = arith.constant 0 : i32
    %c0_i32_0 = arith.constant 0 : i32
    return %arg0, %c0_i32 : i32, i32
  }
  func.func @transform_1(%arg0: i32) -> (i32, i32) {
    %c0_i32 = arith.constant 0 : i32
    %c0_i32_0 = arith.constant 0 : i32
    return %arg0, %c0_i32 : i32, i32
  }
  func.func @transform_2(%arg0: i32) -> (i32, i32, i32) {
    %c0_i32 = arith.constant 0 : i32
    %c0_i32_0 = arith.constant 0 : i32
    %c0_i32_1 = arith.constant 0 : i32
    return %arg0, %c0_i32, %c0_i32_0 : i32, i32, i32
  }
}

</mosaic_0001>

<bundles_post_ra>
// kernel: tpu_custom_call.1
= control target key start
LH: loop header
LB: loop body
LE: loop exit
PB: predicated region body
PF: predicated region fallthrough
CT: control target
= control target key end

     0   :  { %vm60_vm0 = vcmask 261120   ;;  %s881_s0 = inlined_call_operand.vmem [shape: f32[128,32], index: 0, kind: input, shape index: {}]   ;;  %s882_s1 = inlined_call_operand.vmem [shape: f32[128,32], index: 1, kind: input, shape index: {}]   ;;  %s883_s2 = inlined_call_operand.hbm [shape: f32[1,1,128], index: 2, kind: output, shape index: {}]  }
   0x1   :  { %v28_v0 = vld [vmem:[%s882_s1] sm:$0xff]  ;;  %v542_v2 = vld [vmem:[%s882_s1 + $0x8] sm:$0xff]  ;;  %v556_v9 = vld [vmem:[%s882_s1 + $0x10] sm:$0xff] }
   0x2   :  { %v12_v1 = vld [vmem:[%s881_s0] sm:$0xff]  ;;  %v173_v3 = vmul.f32 %v28_v0, %v28_v0  ;;  %v174_v5 = vmul.f32 %v542_v2, %v542_v2  ;;  %v549_v6 = vld [vmem:[%s881_s0 + $0x8] sm:$0xff]  ;;  %v561_v10 = vld [vmem:[%s881_s0 + $0x10] sm:$0xff]  ;;  %v175_v15 = vmul.f32 %v556_v9, %v556_v9 }
   0x3   :  { %v109_v4 = vmul.f32 %v12_v1, %v12_v1  ;;  %v44_v7 = vmul.f32 %v28_v0, %v12_v1  ;;  %v110_v8 = vmul.f32 %v549_v6, %v549_v6  ;;  %v111_v16 = vmul.f32 %v561_v10, %v561_v10  ;;  %v574_v17 = vld [vmem:[%s882_s1 + $0x18] sm:$0xff]  ;;  %v590_v23 = vld [vmem:[%s882_s1 + $0x20] sm:$0xff] }
   0x4   :  { %v189_v11 = vsel %vm60_vm0, %v173_v3, 0.0  ;;  %v192_v13 = vsel %vm60_vm0, %v174_v5, 0.0  ;;  %v579_v18 = vld [vmem:[%s881_s0 + $0x18] sm:$0xff]  ;;  %v195_v19 = vsel %vm60_vm0, %v175_v15, 0.0  ;;  %v176_v21 = vmul.f32 %v574_v17, %v574_v17  ;;  %v595_v24 = vld [vmem:[%s881_s0 + $0x20] sm:$0xff] }
   0x5   :  { %v125_v12 = vsel %vm60_vm0, %v109_v4, 0.0  ;;  %190 = vadd.xlane.f32.xlu1 %v189_v11  ;;  %v128_v14 = vsel %vm60_vm0, %v110_v8, 0.0  ;;  %v131_v20 = vsel %vm60_vm0, %v111_v16, 0.0  ;;  %v112_v22 = vmul.f32 %v579_v18, %v579_v18 }
   0x6   :  { %126 = vadd.xlane.f32.xlu0 %v125_v12 }
   0x9   :  { %193 = vadd.xlane.f32.xlu1 %v192_v13 }
   0xa   :  { %129 = vadd.xlane.f32.xlu0 %v128_v14 }
   0xb   :  { %7 = vsyncpa [#allocation3], 0  ;;  %v198_v25 = vsel %vm60_vm0, %v176_v21, 0.0  ;;  %v134_v26 = vsel %vm60_vm0, %v112_v22, 0.0  ;;  %v177_v27 = vmul.f32 %v590_v23, %v590_v23  ;;  %v113_v28 = vmul.f32 %v595_v24, %v595_v24  ;;  %v606_v29 = vld [vmem:[%s882_s1 + $0x28] sm:$0xff]  ;;  %v625_v36 = vld [vmem:[%s882_s1 + $0x30] sm:$0xff] }
   0xc   :  { %v611_v30 = vld [vmem:[%s881_s0 + $0x28] sm:$0xff]  ;;  %v178_v31 = vmul.f32 %v606_v29, %v606_v29  ;;  %v620_v35 = vsel %vm60_vm0, %v44_v7, 0.0  ;;  %v630_v37 = vld [vmem:[%s881_s0 + $0x30] sm:$0xff]  ;;  %v179_v40 = vmul.f32 %v625_v36, %v625_v36  ;;  %v641_v42 = vld [vmem:[%s882_s1 + $0x38] sm:$0xff]  ;;  %vm344_vm1 = vcmask 130112  }
   0xd   :  { %196 = vadd.xlane.f32.xlu1 %v195_v19  ;;  %v201_v32 = vsel %vm60_vm0, %v177_v27, 0.0  ;;  %v137_v33 = vsel %vm60_vm0, %v113_v28, 0.0  ;;  %v114_v34 = vmul.f32 %v611_v30, %v611_v30  ;;  %v115_v41 = vmul.f32 %v630_v37, %v630_v37  ;;  %v646_v43 = vld [vmem:[%s881_s0 + $0x38] sm:$0xff]  ;;  %v657_v48 = vld [vmem:[%s882_s1 + $0x40] sm:$0xff]  ;;  %v673_v54 = vld [vmem:[%s882_s1 + $0x48] sm:$0xff] }
   0xe   :  { %132 = vadd.xlane.f32.xlu0 %v131_v20  ;;  %v204_v38 = vsel %vm60_vm0, %v178_v31, 0.0  ;;  %v207_v44 = vsel %vm60_vm0, %v179_v40, 0.0  ;;  %v180_v46 = vmul.f32 %v641_v42, %v641_v42  ;;  %v116_v47 = vmul.f32 %v646_v43, %v646_v43  ;;  %v662_v49 = vld [vmem:[%s881_s0 + $0x40] sm:$0xff]  ;;  %v678_v55 = vld [vmem:[%s881_s0 + $0x48] sm:$0xff]  ;;  %v689_v60 = vld [vmem:[%s882_s1 + $0x50] sm:$0xff] }
   0xf   :  { %v140_v39 = vsel %vm60_vm0, %v114_v34, 0.0  ;;  %v143_v45 = vsel %vm60_vm0, %v115_v41, 0.0  ;;  %v181_v52 = vmul.f32 %v657_v48, %v657_v48  ;;  %v117_v53 = vmul.f32 %v662_v49, %v662_v49  ;;  %v694_v61 = vld [vmem:[%s881_s0 + $0x50] sm:$0xff]  ;;  %v705_v3 = vld [vmem:[%s882_s1 + $0x58] sm:$0xff]  ;;  %v721_v12 = vld [vmem:[%s882_s1 + $0x60] sm:$0xff] }
  0x10   :  { %v210_v50 = vsel %vm60_vm0, %v180_v46, 0.0  ;;  %v146_v51 = vsel %vm60_vm0, %v116_v47, 0.0  ;;  %v182_v58 = vmul.f32 %v673_v54, %v673_v54  ;;  %v118_v59 = vmul.f32 %v678_v55, %v678_v55  ;;  %v710_v4 = vld [vmem:[%s881_s0 + $0x58] sm:$0xff]  ;;  %v726_v13 = vld [vmem:[%s881_s0 + $0x60] sm:$0xff]  ;;  %v41_v20 = vld [vmem:[%s882_s1 + $0x68] sm:$0xff] }
  0x11   :  { %199 = vadd.xlane.f32.xlu1 %v198_v25  ;;  %v213_v56 = vsel %vm60_vm0, %v181_v52, 0.0  ;;  %v149_v57 = vsel %vm60_vm0, %v117_v53, 0.0  ;;  %v183_v0 = vmul.f32 %v689_v60, %v689_v60  ;;  %v119_v1 = vmul.f32 %v694_v61, %v694_v61  ;;  %v25_v21 = vld [vmem:[%s881_s0 + $0x68] sm:$0xff]  ;;  %v42_v28 = vld [vmem:[%s882_s1 + $0x70] sm:$0xff]  ;;  %v27_v40 = vld [vmem:[%s881_s0 + $0x78] sm:$0xff] }
  0x12   :  { %135 = vadd.xlane.f32.xlu0 %v134_v26  ;;  %v216_v62 = vsel %vm60_vm0, %v182_v58, 0.0  ;;  %v152_v63 = vsel %vm60_vm0, %v118_v59, 0.0  ;;  %v184_v8 = vmul.f32 %v705_v3, %v705_v3  ;;  %v120_v11 = vmul.f32 %v710_v4, %v710_v4  ;;  %v26_v31 = vld [vmem:[%s881_s0 + $0x70] sm:$0xff]  ;;  %s517_s0 = smov [#allocation2]  }
  0x13   :  { %v219_v5 = vsel %vm60_vm0, %v183_v0, 0.0  ;;  %v155_v7 = vsel %vm60_vm0, %v119_v1, 0.0  ;;  %v185_v16 = vmul.f32 %v721_v12, %v721_v12  ;;  %v121_v19 = vmul.f32 %v726_v13, %v726_v13 }
  0x14   :  { %v222_v14 = vsel %vm60_vm0, %v184_v8, 0.0  ;;  %v158_v15 = vsel %vm60_vm0, %v120_v11, 0.0  ;;  %v186_v26 = vmul.f32 %v41_v20, %v41_v20  ;;  %v122_v27 = vmul.f32 %v25_v21, %v25_v21 }
  0x15   :  { %202 = vadd.xlane.f32.xlu1 %v201_v32  ;;  %v225_v22 = vsel %vm60_vm0, %v185_v16, 0.0  ;;  %v161_v25 = vsel %vm60_vm0, %v121_v19, 0.0  ;;  %v187_v34 = vmul.f32 %v42_v28, %v42_v28  ;;  %v124_v46 = vmul.f32 %v27_v40, %v27_v40 }
  0x16   :  { %138 = vadd.xlane.f32.xlu0 %v137_v33  ;;  %v228_v32 = vsel %vm60_vm0, %v186_v26, 0.0  ;;  %v164_v33 = vsel %vm60_vm0, %v122_v27, 0.0  ;;  %v47_v53 = vmul.f32 %v574_v17, %v579_v18  ;;  %vm351_vm2 = vcmask 195712  }
  0x17   :  { %v231_v41 = vsel %vm60_vm0, %v187_v34, 0.0  ;;  %vm358_vm3 = vcmask 261312   ;;  %vm365_vm4 = vcmask 326912   ;;  %vm372_vm5 = vcmask 392512  }
  0x18   :  { %vm379_vm6 = vcmask 458112   ;;  %vm386_vm7 = vcmask 523712   ;;  %vm393_vm8 = vcmask 589312   ;;  %vm400_vm9 = vcmask 654912  }
  0x19   :  { %205 = vadd.xlane.f32.xlu1 %v204_v38  ;;  %v123_v38 = vmul.f32 %v26_v31, %v26_v31  ;;  %vm407_vm10 = vcmask 720512   ;;  %vm414_vm11 = vcmask 786112   ;;  %vm421_vm12 = vcmask 851712  }
  0x1a   :  { %141 = vadd.xlane.f32.xlu0 %v140_v39  ;;  %v43_v39 = vld [vmem:[%s882_s1 + $0x78] sm:$0xff]  ;;  %vm428_vm13 = vcmask 917312   ;;  %vm435_vm14 = vcmask 982912   ;;  %s452_s1 = sshll.u32 %s517_s0, 4  ;;  %vm442_vm15 = vcmask 1048512   ;;  %s453_s1 = int_to_ptr.vmem [resolvable:$true] %s452_s1 }
  0x1b   :  { %s493_s17 = scalar_lea.vmem %s453_s1, 16  ;;  %s497_s18 = scalar_lea.vmem %s453_s1, 32 }
  0x1c   :  { %p494_p0 = scmp.ne.s32.totalorder %s453_s1, %s493_s17  ;;  %p498_p1 = scmp.lt.s32.totalorder %s453_s1, %s453_s1 }
  0x1d   :  { %208 = vadd.xlane.f32.xlu1 %v207_v44  ;;  %v167_v44 = vsel %vm60_vm0, %v123_v38, 0.0  ;;  %p499_p2 = scmp.lt.s32.totalorder %s497_s18, %s493_s17 }
  0x1e   :  { %144 = vadd.xlane.f32.xlu0 %v143_v45  ;;  %v188_v45 = vmul.f32 %v43_v39, %v43_v39 }
  0x1f   :  { %p500_p3 = por %p499_p2, %p498_p1 }
  0x20   :  { %v234_v47 = vsel %vm60_vm0, %v188_v45, 0.0 }
  0x21   :  { %211 = vadd.xlane.f32.xlu1 %v210_v50  ;;  %v170_v50 = vsel %vm60_vm0, %v124_v46, 0.0  ;;  %p501_p4 = pnand %p500_p3, %p494_p0 }
  0x22   :  { %147 = vadd.xlane.f32.xlu0 %v146_v51  ;;  %v45_v51 = vmul.f32 %v542_v2, %v549_v6  ;;  %v49_v2 = vmul.f32 %v606_v29, %v611_v30  ;;  %v48_v6 = vmul.f32 %v590_v23, %v595_v24  ;;  %v53_v23 = vmul.f32 %v673_v54, %v678_v55 }
  0x23   :  { %v52_v24 = vmul.f32 %v657_v48, %v662_v49  ;;  %v57_v55 = vmul.f32 %v41_v20, %v25_v21  ;;  %v56_v48 = vmul.f32 %v721_v12, %v726_v13 }
  0x24   :  { %v64_v52 = vsel %vm60_vm0, %v45_v51, 0.0  ;;  %v76_v17 = vsel %vm60_vm0, %v49_v2, 0.0  ;;  %v73_v18 = vsel %vm60_vm0, %v48_v6, 0.0  ;;  %v88_v30 = vsel %vm60_vm0, %v53_v23, 0.0 }
  0x25   :  { %214 = vadd.xlane.f32.xlu1 %v213_v56  ;;  %v46_v56 = vmul.f32 %v556_v9, %v561_v10  ;;  %v51_v9 = vmul.f32 %v641_v42, %v646_v43  ;;  %v50_v10 = vmul.f32 %v625_v36, %v630_v37  ;;  %v85_v42 = vsel %vm60_vm0, %v52_v24, 0.0 }
  0x26   :  { %150 = vadd.xlane.f32.xlu0 %v149_v57  ;;  %v70_v57 = vsel %vm60_vm0, %v47_v53, 0.0  ;;  %v55_v36 = vmul.f32 %v705_v3, %v710_v4  ;;  %v54_v37 = vmul.f32 %v689_v60, %v694_v61  ;;  %v100_v49 = vsel %vm60_vm0, %v57_v55, 0.0 }
  0x27   :  { %v67_v58 = vsel %vm60_vm0, %v46_v56, 0.0  ;;  %v79_v29 = vsel %vm60_vm0, %v50_v10, 0.0  ;;  %v97_v59 = vsel %vm60_vm0, %v56_v48, 0.0 }
  0x28   :  { %v94_v43 = vsel %vm60_vm0, %v55_v36, 0.0  ;;  %v91_v54 = vsel %vm60_vm0, %v54_v37, 0.0 }
  0x29   :  { %217 = vadd.xlane.f32.xlu1 %v216_v62  ;;  %v59_v62 = vmul.f32 %v43_v39, %v27_v40 }
  0x2a   :  { %153 = vadd.xlane.f32.xlu0 %v152_v63  ;;  %v58_v63 = vmul.f32 %v42_v28, %v26_v31 }
  0x2b   :  { %v106_v60 = vsel %vm60_vm0, %v59_v62, 0.0 }
  0x2c   :  { %v103_v61 = vsel %vm60_vm0, %v58_v63, 0.0 }
  0x2d   :  { %220 = vadd.xlane.f32.xlu1 %v219_v5 }
  0x2e   :  { %156 = vadd.xlane.f32.xlu0 %v155_v7 }
  0x31   :  { %223 = vadd.xlane.f32.xlu1 %v222_v14 }
  0x32   :  { %159 = vadd.xlane.f32.xlu0 %v158_v15 }
  0x35   :  { %226 = vadd.xlane.f32.xlu1 %v225_v22 }
  0x36   :  { %162 = vadd.xlane.f32.xlu0 %v161_v25 }
  0x39   :  { %229 = vadd.xlane.f32.xlu1 %v228_v32 }
  0x3a   :  { %165 = vadd.xlane.f32.xlu0 %v164_v33 }
  0x3d   :  { %232 = vadd.xlane.f32.xlu1 %v231_v41 }
  0x3e   :  { %168 = vadd.xlane.f32.xlu0 %v167_v44 }
  0x41   :  { %235 = vadd.xlane.f32.xlu1 %v234_v47  ;;  %v333_v47 = vlaneseq }
  0x42   :  { %171 = vadd.xlane.f32.xlu0 %v170_v50 }
  0x45   :  { %65 = vadd.xlane.f32.xlu1 %v64_v52 }
  0x46   :  { %62 = vadd.xlane.f32.xlu0 %v620_v35  ;;  %v82_v35 = vsel %vm60_vm0, %v51_v9, 0.0 }
  0x49   :  { %71 = vadd.xlane.f32.xlu1 %v70_v57 }
  0x4a   :  { %68 = vadd.xlane.f32.xlu0 %v67_v58  ;;  %v804_v58 = vand.u32 127, %v333_v47 }
  0x4c   :  { %v818_v36 = vadd.s32 4294967272, %v804_v58 }
  0x4d   :  { %77 = vadd.xlane.f32.xlu1 %v76_v17 }
  0x4e   :  { %74 = vadd.xlane.f32.xlu0 %v73_v18 }
  0x51   :  { %83 = vadd.xlane.f32.xlu1 %v82_v35  ;;  %v810_v35 = vshrl.u32 %v333_v47, 7  ;;  %v374_v47 = vadd.s32 4294967248, %v804_v58 }
  0x52   :  { %80 = vadd.xlane.f32.xlu0 %v79_v29  ;;  %v339_v29 = vadd.s32 4294967288, %v804_v58 }
  0x55   :  { %89 = vadd.xlane.f32.xlu1 %v88_v30 }
  0x56   :  { %86 = vadd.xlane.f32.xlu0 %v85_v42 }
  0x59   :  { %95 = vadd.xlane.f32.xlu1 %v94_v43 }
  0x5a   :  { %92 = vadd.xlane.f32.xlu0 %v91_v54  ;;  %v346_v54 = vadd.s32 4294967280, %v804_v58 }
  0x5d   :  { %101 = vadd.xlane.f32.xlu1 %v100_v49  ;;  %v342_v49 = vsub.s32 %v339_v29, %v810_v35 }
  0x5e   :  { %98 = vadd.xlane.f32.xlu0 %v97_v59  ;;  %v337_v59 = vsub.s32 %v804_v58, %v810_v35 }
  0x61   :  { %107 = vadd.xlane.f32.xlu1 %v106_v60 }
  0x62   :  { %104 = vadd.xlane.f32.xlu0 %v103_v61 }
  0x92   :  { %v191_v0 = vpop.xlane.xlu1 %190 }
  0x93   :  { %v127_v1 = vpop.xlane.xlu0 %126 }
  0x94   :  { %v237_v34 = vmul.f32 %v191_v0, %v127_v1  ;;  %v825_v0 = vadd.s32 4294967256, %v804_v58  ;;  %v828_v1 = vadd.s32 4294967264, %v804_v58 }
  0x96   :  { %v194_v3 = vpop.xlane.xlu1 %193  ;;  %v253_v41 = vmax.f32 %v237_v34, 1e-16 }
  0x97   :  { %v130_v4 = vpop.xlane.xlu0 %129 }
  0x98   :  { %v238_v38 = vmul.f32 %v194_v3, %v130_v4  ;;  %461 = vrsqrt.f32 %v253_v41 }
  0x9a   :  { %v197_v5 = vpop.xlane.xlu1 %196  ;;  %v254_v45 = vmax.f32 %v238_v38, 1e-16 }
  0x9b   :  { %v133_v7 = vpop.xlane.xlu0 %132 }
  0x9c   :  { %v239_v44 = vmul.f32 %v197_v5, %v133_v7  ;;  %463 = vrsqrt.f32 %v254_v45 }
  0x9e   :  { %v200_v8 = vpop.xlane.xlu1 %199  ;;  %v255_v52 = vmax.f32 %v239_v44, 1e-16 }
  0x9f   :  { %v136_v11 = vpop.xlane.xlu0 %135 }
  0xa0   :  { %v240_v46 = vmul.f32 %v200_v8, %v136_v11  ;;  %465 = vrsqrt.f32 %v255_v52  ;;  %v356_v8 = vsub.s32 %v818_v36, %v810_v35  ;;  %v349_v11 = vsub.s32 %v346_v54, %v810_v35 }
  0xa2   :  { %v203_v12 = vpop.xlane.xlu1 %202  ;;  %v256_v56 = vmax.f32 %v240_v46, 1e-16  ;;  %v462_v55 = vpop.eup %461 }
  0xa3   :  { %v139_v13 = vpop.xlane.xlu0 %138 }
  0xa4   :  { %v241_v53 = vmul.f32 %v203_v12, %v139_v13  ;;  %467 = vrsqrt.f32 %v256_v56 }
  0xa6   :  { %v206_v14 = vpop.xlane.xlu1 %205  ;;  %v257_v17 = vmax.f32 %v241_v53, 1e-16  ;;  %v464_v62 = vpop.eup %463 }
  0xa7   :  { %v142_v15 = vpop.xlane.xlu0 %141 }
  0xa8   :  { %v242_v57 = vmul.f32 %v206_v14, %v142_v15  ;;  %469 = vrsqrt.f32 %v257_v17 }
  0xaa   :  { %v209_v16 = vpop.xlane.xlu1 %208  ;;  %v258_v9 = vmax.f32 %v242_v57, 1e-16  ;;  %v466_v12 = vpop.eup %465 }
  0xab   :  { %v145_v19 = vpop.xlane.xlu0 %144 }
  0xac   :  { %v243_v18 = vmul.f32 %v209_v16, %v145_v19  ;;  %471 = vrsqrt.f32 %v258_v9 }
  0xae   :  { %v212_v20 = vpop.xlane.xlu1 %211  ;;  %v259_v30 = vmax.f32 %v243_v18, 1e-16  ;;  %v468_v16 = vpop.eup %467 }
  0xaf   :  { %v148_v21 = vpop.xlane.xlu0 %147 }
  0xb0   :  { %v244_v10 = vmul.f32 %v212_v20, %v148_v21  ;;  %473 = vrsqrt.f32 %v259_v30 }
  0xb2   :  { %v215_v22 = vpop.xlane.xlu1 %214  ;;  %v260_v37 = vmax.f32 %v244_v10, 1e-16  ;;  %v470_v34 = vpop.eup %469 }
  0xb3   :  { %v151_v25 = vpop.xlane.xlu0 %150 }
  0xb4   :  { %v245_v42 = vmul.f32 %v215_v22, %v151_v25  ;;  %475 = vrsqrt.f32 %v260_v37  ;;  %v370_v25 = vsub.s32 %v825_v0, %v810_v35 }
  0xb6   :  { %v218_v26 = vpop.xlane.xlu1 %217  ;;  %v261_v3 = vmax.f32 %v245_v42, 1e-16  ;;  %v472_v41 = vpop.eup %471 }
  0xb7   :  { %v154_v27 = vpop.xlane.xlu0 %153 }
  0xb8   :  { %v246_v43 = vmul.f32 %v218_v26, %v154_v27  ;;  %477 = vrsqrt.f32 %v261_v3 }
  0xba   :  { %v221_v28 = vpop.xlane.xlu1 %220  ;;  %v262_v7 = vmax.f32 %v246_v43, 1e-16  ;;  %v474_v9 = vpop.eup %473  ;;  %v395_v43 = vadd.s32 4294967224, %v804_v58 }
  0xbb   :  { %v157_v31 = vpop.xlane.xlu0 %156 }
  0xbc   :  { %v247_v48 = vmul.f32 %v221_v28, %v157_v31  ;;  %v363_v28 = vsub.s32 %v828_v1, %v810_v35  ;;  %479 = vrsqrt.f32 %v262_v7  ;;  %v398_v3 = vsub.s32 %v395_v43, %v810_v35 }
  0xbe   :  { %v224_v32 = vpop.xlane.xlu1 %223  ;;  %v263_v13 = vmax.f32 %v247_v48, 1e-16  ;;  %v476_v36 = vpop.eup %475 }
  0xbf   :  { %v160_v33 = vpop.xlane.xlu0 %159 }
  0xc0   :  { %v248_v63 = vmul.f32 %v224_v32, %v160_v33  ;;  %481 = vrsqrt.f32 %v263_v13 }
  0xc2   :  { %v227_v39 = vpop.xlane.xlu1 %226  ;;  %v264_v19 = vmax.f32 %v248_v63, 1e-16  ;;  %v478_v63 = vpop.eup %477 }
  0xc3   :  { %v163_v40 = vpop.xlane.xlu0 %162 }
  0xc4   :  { %v249_v20 = vmul.f32 %v227_v39, %v163_v40  ;;  %v381_v40 = vadd.s32 4294967240, %v804_v58  ;;  %483 = vrsqrt.f32 %v264_v19 }
  0xc6   :  { %v800_v50 = vpop.xlane.xlu1 %229  ;;  %v265_v44 = vmax.f32 %v249_v20, 1e-16  ;;  %v384_v42 = vsub.s32 %v381_v40, %v810_v35  ;;  %v480_v1 = vpop.eup %479  ;;  %v409_v20 = vadd.s32 4294967208, %v804_v58 }
  0xc7   :  { %v802_v51 = vpop.xlane.xlu0 %165 }
  0xc8   :  { %v250_v31 = vmul.f32 %v800_v50, %v802_v51  ;;  %485 = vrsqrt.f32 %v265_v44  ;;  %v423_v44 = vadd.s32 4294967192, %v804_v58 }
  0xca   :  { %v806_v2 = vpop.xlane.xlu1 %232  ;;  %v266_v56 = vmax.f32 %v250_v31, 1e-16 }
  0xcb   :  { %v808_v6 = vpop.xlane.xlu0 %168 }
  0xcc   :  { %v251_v52 = vmul.f32 %v806_v2, %v808_v6  ;;  %v377_v6 = vsub.s32 %v374_v47, %v810_v35  ;;  %487 = vrsqrt.f32 %v266_v56  ;;  %v437_v56 = vadd.s32 4294967176, %v804_v58 }
  0xce   :  { %v813_v23 = vpop.xlane.xlu1 %235  ;;  %v440_v43 = vsub.s32 %v437_v56, %v810_v35 }
  0xcf   :  { %v815_v24 = vpop.xlane.xlu0 %171 }
  0xd0   :  { %v252_v57 = vmul.f32 %v813_v23, %v815_v24  ;;  %v388_v23 = vadd.s32 4294967232, %v804_v58  ;;  %v267_v24 = vmax.f32 %v251_v52, 1e-16 }
  0xd2   :  { %v66_v60 = vpop.xlane.xlu1 %65  ;;  %489 = vrsqrt.f32 %v267_v24 }
  0xd3   :  { %v63_v61 = vpop.xlane.xlu0 %62  ;;  %v286_v4 = vmul.f32 %v464_v62, %v66_v60 }
  0xd4   :  { %v285_v5 = vmul.f32 %v462_v55, %v63_v61 }
  0xd5   :  { %v302_v14 = vmul.f32 10.0, %v286_v4 }
  0xd6   :  { %v301_v15 = vmul.f32 10.0, %v285_v5  ;;  %v72_v21 = vpop.xlane.xlu1 %71  ;;  %v391_v5 = vsub.s32 %v388_v23, %v810_v35 }
  0xd7   :  { %v69_v22 = vpop.xlane.xlu0 %68  ;;  %v288_v26 = vmul.f32 %v468_v16, %v72_v21  ;;  %v343_v32 = vrot.slane %v302_v14, %v342_v49  ;;  %v268_v49 = vmax.f32 %v252_v57, 1e-16 }
  0xd8   :  { %v287_v27 = vmul.f32 %v466_v12, %v69_v22  ;;  %v338_v33 = vrot.slane %v301_v15, %v337_v59 }
  0xd9   :  { %v304_v38 = vmul.f32 10.0, %v288_v26  ;;  %491 = vrsqrt.f32 %v268_v49 }
  0xda   :  { %v303_v39 = vmul.f32 10.0, %v287_v27  ;;  %v78_v45 = vpop.xlane.xlu1 %77  ;;  %v345_v17 = vsel %vm344_vm1, %v343_v32, %v338_v33 }
  0xdb   :  { %v75_v46 = vpop.xlane.xlu0 %74  ;;  %v290_v51 = vmul.f32 %v472_v41, %v78_v45  ;;  %v357_v18 = vrot.slane %v304_v38, %v356_v8  ;;  %v402_v8 = vadd.s32 4294967216, %v804_v58  ;;  %v412_v41 = vsub.s32 %v409_v20, %v810_v35 }
  0xdc   :  { %v350_v50 = vrot.slane %v303_v39, %v349_v11  ;;  %v289_v53 = vmul.f32 %v470_v34, %v75_v46  ;;  %v482_v11 = vpop.eup %481 }
  0xdd   :  { %v306_v29 = vmul.f32 10.0, %v290_v51  ;;  %v484_v15 = vpop.eup %483  ;;  %v405_v33 = vsub.s32 %v402_v8, %v810_v35 }
  0xde   :  { %v352_v10 = vsel %vm351_vm2, %v350_v50, %v345_v17  ;;  %v305_v30 = vmul.f32 10.0, %v289_v53  ;;  %v84_v2 = vpop.xlane.xlu1 %83  ;;  %v486_v38 = vpop.eup %485 }
  0xdf   :  { %v81_v37 = vpop.xlane.xlu0 %80  ;;  %v292_v55 = vmul.f32 %v476_v36, %v84_v2  ;;  %v371_v59 = vrot.slane %v306_v29, %v370_v25  ;;  %v359_v62 = vsel %vm358_vm3, %v357_v18, %v352_v10  ;;  %v488_v52 = vpop.eup %487 }
  0xe0   :  { %v364_v54 = vrot.slane %v305_v30, %v363_v28  ;;  %v291_v48 = vmul.f32 %v474_v9, %v81_v37  ;;  %v416_v28 = vadd.s32 4294967200, %v804_v58  ;;  %v430_v9 = vadd.s32 4294967184, %v804_v58 }
  0xe1   :  { %v308_v61 = vmul.f32 10.0, %v292_v55  ;;  %v426_v30 = vsub.s32 %v423_v44, %v810_v35 }
  0xe2   :  { %v366_v60 = vsel %vm365_vm4, %v364_v54, %v359_v62  ;;  %v307_v0 = vmul.f32 10.0, %v291_v48  ;;  %v90_v4 = vpop.xlane.xlu1 %89  ;;  %v419_v51 = vsub.s32 %v416_v28, %v810_v35  ;;  %v433_v48 = vsub.s32 %v430_v9, %v810_v35 }
  0xe3   :  { %v87_v7 = vpop.xlane.xlu0 %86  ;;  %v294_v13 = vmul.f32 %v480_v1, %v90_v4  ;;  %v385_v16 = vrot.slane %v308_v61, %v384_v42  ;;  %v373_v19 = vsel %vm372_vm5, %v371_v59, %v366_v60  ;;  %v490_v42 = vpop.eup %489 }
  0xe4   :  { %v378_v12 = vrot.slane %v307_v0, %v377_v6  ;;  %v293_v14 = vmul.f32 %v478_v63, %v87_v7  ;;  %v492_v37 = vpop.eup %491 }
  0xe5   :  { %v310_v22 = vmul.f32 10.0, %v294_v13 }
  0xe6   :  { %v380_v21 = vsel %vm379_vm6, %v378_v12, %v373_v19  ;;  %v309_v25 = vmul.f32 10.0, %v293_v14  ;;  %v96_v26 = vpop.xlane.xlu1 %95 }
  0xe7   :  { %v93_v27 = vpop.xlane.xlu0 %92  ;;  %v296_v32 = vmul.f32 %v484_v15, %v96_v26  ;;  %v399_v39 = vrot.slane %v310_v22, %v398_v3  ;;  %v387_v40 = vsel %vm386_vm7, %v385_v16, %v380_v21 }
  0xe8   :  { %v392_v31 = vrot.slane %v309_v25, %v391_v5  ;;  %v295_v34 = vmul.f32 %v482_v11, %v93_v27 }
  0xe9   :  { %v312_v46 = vmul.f32 10.0, %v296_v32 }
  0xea   :  { %v394_v45 = vsel %vm393_vm8, %v392_v31, %v387_v40  ;;  %v311_v47 = vmul.f32 10.0, %v295_v34  ;;  %v102_v50 = vpop.xlane.xlu1 %101 }
  0xeb   :  { %v99_v53 = vpop.xlane.xlu0 %98  ;;  %v298_v17 = vmul.f32 %v488_v52, %v102_v50  ;;  %v413_v10 = vrot.slane %v312_v46, %v412_v41  ;;  %v401_v29 = vsel %vm400_vm9, %v399_v39, %v394_v45 }
  0xec   :  { %v406_v57 = vrot.slane %v311_v47, %v405_v33  ;;  %v297_v18 = vmul.f32 %v486_v38, %v99_v53 }
  0xed   :  { %v314_v2 = vmul.f32 10.0, %v298_v17 }
  0xee   :  { %v408_v36 = vsel %vm407_vm10, %v406_v57, %v401_v29  ;;  %v313_v6 = vmul.f32 10.0, %v297_v18  ;;  %v108_v23 = vpop.xlane.xlu1 %107 }
  0xef   :  { %v105_v24 = vpop.xlane.xlu0 %104  ;;  %v300_v55 = vmul.f32 %v492_v37, %v108_v23  ;;  %v427_v49 = vrot.slane %v314_v2, %v426_v30  ;;  %v415_v59 = vsel %vm414_vm11, %v413_v10, %v408_v36 }
  0xf0   :  { %v420_v54 = vrot.slane %v313_v6, %v419_v51  ;;  %v299_v58 = vmul.f32 %v490_v42, %v105_v24 }
  0xf1   :  { %v316_v63 = vmul.f32 10.0, %v300_v55 }
  0xf2   :  { %v422_v62 = vsel %vm421_vm12, %v420_v54, %v415_v59  ;;  %v315_v60 = vmul.f32 10.0, %v299_v58 }
  0xf3   :  { %v441_v61 = vrot.slane %v316_v63, %v440_v43  ;;  %v429_v1 = vsel %vm428_vm13, %v427_v49, %v422_v62 }
  0xf4   :  { %v434_v0 = vrot.slane %v315_v60, %v433_v48 }
  0xf6   :  { %v436_v3 = vsel %vm435_vm14, %v434_v0, %v429_v1 }
  0xf7   :  { %v443_v4 = vsel %vm442_vm15, %v441_v61, %v436_v3 }
  0xf8   :  { %445 = vst [vmem:[#allocation2] sm:$0x1] %v443_v4 }
  0xf9   :  { %504 = shalt.err (!%p501_p4)
}
  0xfa   :  { %s505_s21 = scalar_lea.hbm %s883_s2, 16 }
  0xfb   :  { %p506_p5 = scmp.ne.s32.totalorder %s883_s2, %s505_s21  ;;  %p509_p6 = scmp.lt.u32.totalorder %s505_s21, %s883_s2 }
  0xfd   :  { %p511_p7 = pnand %p509_p6, %p506_p5 }
  0xff   :  { %514 = shalt.err (!%p511_p7)
}
 0x100   :  { %455 = dma.vmem_to_hbm [thread:$0]  %s453_s1, 16, %s883_s2, [#allocation3]  }
 0x101   :  { %515 = dma.done.wait [#allocation3], 16  }
 0x102   :  { %516 = vsyncadd [#allocation3], 4294967280 }
 0x103   :  { %459 = vsyncpa [#allocation3], 1 }

</bundles_post_ra>
